<compile_context>
chip_gen: v7x
topology: tpu7x:2x2x1
jax: 0.10.0
libtpu: 0.0.40
codegen_flags: <defaults>
</compile_context>

<pallas_src>
import functools
import math

import jax
import jax.numpy as jnp
from jax import lax
from jax.experimental import pallas as pl
from jax.experimental.pallas import tpu as pltpu


# --------------------------------------------------------------------------- #
# Tiling helpers
# --------------------------------------------------------------------------- #

def _pick_tile(dim: int, preferred: int, granule: int) -> int:
    """Largest granule-aligned divisor of `dim` that is <= `preferred`.

    Falls back to the full dimension (a block equal to the full array dim is
    always layout-legal) only when no aligned divisor exists.
    """
    if dim <= preferred:
        return dim
    start = (min(preferred, dim) // granule) * granule
    for cand in range(start, 0, -granule):
        if dim % cand == 0:
            return cand
    return dim


def _vmem_limit_bytes(estimate: int) -> int:
    # Explicit scoped-VMEM request: at least the estimated working set (x2
    # margin), never above what fits the smallest targeted physical VMEM
    # (v7x: 64 MiB per TensorCore) with headroom for compiler scratch.
    return int(min(60 << 20, max(32 << 20, 2 * estimate)))


# --------------------------------------------------------------------------- #
# Tiled, stacked linear projection:   out[p] = x @ w[p]^T + b[p]
# --------------------------------------------------------------------------- #

def _proj_kernel_nored(x_ref, w_ref, b_ref, o_ref):
    # Reduction axis collapsed (tk == Din): no accumulator scratch needed.
    # x: (tm, Din) any float dtype (cast in-kernel) | w: (1, tn, Din) bf16
    # b: (1, 1, tn) f32 | o: (1, tm, tn)
    x = x_ref[...].astype(jnp.bfloat16)
    acc = lax.dot_general(x, w_ref[0], (((1,), (1,)), ((), ())),
                          preferred_element_type=jnp.float32)
    o_ref[0] = (acc + b_ref[0]).astype(o_ref.dtype)


def _proj_kernel_red(x_ref, w_ref, b_ref, o_ref, acc_ref):
    # General path with a k-loop over Din and an f32 VMEM accumulator.
    kk = pl.program_id(3)

    @pl.when(kk == 0)
    def _():
        acc_ref[...] = jnp.zeros_like(acc_ref)

    acc_ref[...] += lax.dot_general(
        x_ref[...].astype(jnp.bfloat16), w_ref[0],
        (((1,), (1,)), ((), ())), preferred_element_type=jnp.float32)

    @pl.when(kk == pl.num_programs(3) - 1)
    def _():
        o_ref[0] = (acc_ref[...] + b_ref[0]).astype(o_ref.dtype)


def stacked_projection(x2d, w_stack, b_stack, *, out_dtype=jnp.bfloat16,
                       tm_pref=512, tn_pref=512):
    """out[p] = x2d @ w_stack[p].T + b_stack[p]  for all p, in one pallas_call.

    w_stack is (P, Dout, Din) in PyTorch layout (contracted on its LAST dim,
    which the MXU consumes natively as the transposed RHS -> no XLU transpose).
    """
    n, din = x2d.shape
    p_count, dout, _ = w_stack.shape

    # Defensive no-op casts; params are pre-stacked / pre-cast at init time.
    w_stack = w_stack.astype(jnp.bfloat16)
    b3 = b_stack.reshape(p_count, 1, dout).astype(jnp.float32)

    tm = _pick_tile(n, tm_pref, 8)
    tn = _pick_tile(dout, tn_pref, 128)

    x_item = jnp.dtype(x2d.dtype).itemsize
    out_item = jnp.dtype(out_dtype).itemsize

    def _working_set(tk):  # double-buffered VMEM working set for candidate tk
        return 2 * (tm * tk * x_item + tn * tk * 2 + tm * tn * out_item + tn * 4)

    # Collapse the reduction axis whenever the whole Din fits comfortably.
    if _working_set(din) <= (24 << 20):
        tk = din
    else:
        tk = _pick_tile(din, 2048, 128)
    single_k = (tk == din)

    vmem = _vmem_limit_bytes(_working_set(tk) + (0 if single_k else tm * tn * 4))

    if single_k:
        grid = (p_count, n // tm, dout // tn)
        return pl.pallas_call(
            _proj_kernel_nored,
            out_shape=jax.ShapeDtypeStruct((p_count, n, dout), out_dtype),
            grid_spec=pltpu.PrefetchScalarGridSpec(
                num_scalar_prefetch=0,
                grid=grid,
                in_specs=[
                    pl.BlockSpec((tm, tk), lambda p, i, j: (i, 0)),
                    pl.BlockSpec((1, tn, tk), lambda p, i, j: (p, j, 0)),
                    pl.BlockSpec((1, 1, tn), lambda p, i, j: (p, 0, j)),
                ],
                out_specs=pl.BlockSpec((1, tm, tn), lambda p, i, j: (p, i, j)),
            ),
            compiler_params=pltpu.CompilerParams(
                dimension_semantics=("parallel", "parallel", "parallel"),
                vmem_limit_bytes=vmem),
        )(x2d, w_stack, b3)

    grid = (p_count, n // tm, dout // tn, din // tk)
    return pl.pallas_call(
        _proj_kernel_red,
        out_shape=jax.ShapeDtypeStruct((p_count, n, dout), out_dtype),
        grid_spec=pltpu.PrefetchScalarGridSpec(
            num_scalar_prefetch=0,
            grid=grid,
            in_specs=[
                pl.BlockSpec((tm, tk), lambda p, i, j, kk: (i, kk)),
                pl.BlockSpec((1, tn, tk), lambda p, i, j, kk: (p, j, kk)),
                pl.BlockSpec((1, 1, tn), lambda p, i, j, kk: (p, 0, j)),
            ],
            out_specs=pl.BlockSpec((1, tm, tn), lambda p, i, j, kk: (p, i, j)),
            scratch_shapes=[pltpu.VMEM((tm, tn), jnp.float32)],
        ),
        compiler_params=pltpu.CompilerParams(
            dimension_semantics=("parallel", "parallel", "parallel", "arbitrary"),
            vmem_limit_bytes=vmem),
    )(x2d, w_stack, b3)


# --------------------------------------------------------------------------- #
# Multi-head attention core (all heads of one (batch, q-tile) per grid step)
# --------------------------------------------------------------------------- #

def _attn_kernel(*refs, heads, dk, scale, with_mask, with_probs):
    q_ref, k_ref, v_ref = refs[:3]
    pos = 3
    mask_ref = None
    if with_mask:
        mask_ref = refs[pos]
        pos += 1
    o_ref = refs[pos]
    pos += 1
    probs_ref = refs[pos] if with_probs else None

    madd = None
    if with_mask:
        # Finite large negative instead of -inf (fully-masked rows -> uniform,
        # not NaN).  Additive mask is built ONCE per grid step and shared by
        # all heads (per-head add replaces a per-head select).
        neg = jnp.float32(jnp.finfo(jnp.float32).min / 2)
        madd = jnp.where(mask_ref[0, 0] != 0, jnp.float32(0.0), neg)  # (tq, sk)

    for h in range(heads):                              # static unroll over heads
        lo = h * dk
        # Ref slices are zero-cost views: only the per-head column band is
        # loaded; the full (sk, D) K / V are never live as values.
        qh = q_ref[0, 0, :, lo:lo + dk]                 # (tq, dk)
        kh = k_ref[0, 0, :, lo:lo + dk]                 # (sk, dk)
        vh = v_ref[0, 0, :, lo:lo + dk]                 # (sk, dk)

        # Scale on q (tq x dk elems) rather than on the scores (tq x sk elems).
        qh = qh * jnp.asarray(scale, qh.dtype)

        # q . k^T via dot_general contracting last dims (no XLU transpose).
        s = lax.dot_general(qh, kh, (((1,), (1,)), ((), ())),
                            preferred_element_type=jnp.float32)
        if with_mask:
            s = s + madd

        # fp32 softmax; EUP approx reciprocal (error below bf16 resolution).
        s = s - jnp.max(s, axis=-1, keepdims=True)
        e = jnp.exp(s)
        p = e * pl.reciprocal(jnp.sum(e, axis=-1, keepdims=True), approx=True)

        if with_probs:
            probs_ref[0, h] = p.astype(probs_ref.dtype)

        # TODO(synk): dropout on the probabilities omitted (eval-mode identity).
        ctx_h = jnp.dot(p.astype(vh.dtype), vh, preferred_element_type=jnp.float32)
        # Per-head direct store into the lane band of the merged (tq, D) output:
        # no concat epilogue, no H simultaneously-live f32 context tiles.
        o_ref[0, :, lo:lo + dk] = ctx_h.astype(o_ref.dtype)


def attention_pallas(q_sel, k_sel, v_sel, mask, *, heads, scale,
                     return_probs=True, probs_dtype=jnp.bfloat16,
                     out_dtype=jnp.bfloat16, tq_preferred=256):
    """q_sel/k_sel/v_sel are (array, index) pairs where array is (P, B, S, D)
    (the stacked projection output, consumed zero-copy via the index_maps)."""
    q_arr, qi = q_sel
    k_arr, ki = k_sel
    v_arr, vi = v_sel
    _, b_sz, sq, d = q_arr.shape
    sk = k_arr.shape[2]
    dk = d // heads

    tq = _pick_tile(sq, tq_preferred, 8)
    # v7x shards parallel grid axes over 2 TensorCores: keep >= 2 grid steps
    # for small-batch shapes.
    if b_sz * (sq // tq) < 2:
        tq = _pick_tile(sq, max(8, tq // 2), 8)
    # Grid order (b, qt) with qt innermost is intentional: the whole-S K/V
    # block index is constant across consecutive steps, so Pallas only
    # re-DMAs K/V when the batch index changes.  Do not reorder.
    grid = (b_sz, sq // tq)

    with_mask = mask is not None
    kernel = functools.partial(_attn_kernel, heads=heads, dk=dk, scale=scale,
                               with_mask=with_mask, with_probs=return_probs)

    act_item = jnp.dtype(q_arr.dtype).itemsize
    in_specs = [
        pl.BlockSpec((1, 1, tq, d), lambda b, qt, i=qi: (i, b, qt, 0)),
        # Whole-S K/V: single-buffered (only re-fetched on a batch change);
        # halves their VMEM footprint (critical on v7x 64 MiB / v5e 16 MiB).
        pl.BlockSpec((1, 1, sk, d), lambda b, qt, i=ki: (i, b, 0, 0),
                     pipeline_mode=pl.Buffered(1)),
        pl.BlockSpec((1, 1, sk, d), lambda b, qt, i=vi: (i, b, 0, 0),
                     pipeline_mode=pl.Buffered(1)),
    ]
    inputs = [q_arr, k_arr, v_arr]

    vmem_est = (2 * tq * d * act_item            # Q (double-buffered)
                + 2 * sk * d * act_item          # K + V (single-buffered)
                + 2 * tq * d * jnp.dtype(out_dtype).itemsize
                + 4 * tq * sk * 4 + tq * dk * 4)  # in-flight f32 intermediates
    if with_mask:
        # mask: (B or 1, 1, Sq, Sk), any dtype (int8 recommended); != 0 keeps.
        has_batch = mask.shape[0] > 1
        in_specs.append(pl.BlockSpec(
            (1, 1, tq, sk),
            lambda b, qt, hb=has_batch: ((b if hb else 0), 0, qt, 0)))
        inputs.append(mask)
        vmem_est += 2 * tq * sk * jnp.dtype(mask.dtype).itemsize

    out_shape = [jax.ShapeDtypeStruct((b_sz, sq, d), out_dtype)]
    out_specs = [pl.BlockSpec((1, tq, d), lambda b, qt: (b, qt, 0))]
    if return_probs:
        # Full (B,H,S,S) probs are a module-semantics output; bf16 + a single
        # buffer keep their VMEM + HBM-writeback cost in check.
        # TODO(synk): long-S production path should use return_probs=False with
        # a flash-style KV-tiled online-softmax variant.
        out_shape.append(jax.ShapeDtypeStruct((b_sz, heads, sq, sk), probs_dtype))
        out_specs.append(pl.BlockSpec((1, heads, tq, sk),
                                      lambda b, qt: (b, 0, qt, 0),
                                      pipeline_mode=pl.Buffered(1)))
        vmem_est += heads * tq * sk * jnp.dtype(probs_dtype).itemsize

    res = pl.pallas_call(
        kernel,
        out_shape=tuple(out_shape),
        grid_spec=pltpu.PrefetchScalarGridSpec(
            num_scalar_prefetch=0,
            grid=grid,
            in_specs=in_specs,
            out_specs=tuple(out_specs),
        ),
        compiler_params=pltpu.CompilerParams(
            dimension_semantics=("parallel", "parallel"),
            vmem_limit_bytes=_vmem_limit_bytes(vmem_est)),
    )(*inputs)

    ctx = res[0]
    probs = res[1] if return_probs else None
    return ctx, probs


# --------------------------------------------------------------------------- #
# Full MHA block
# --------------------------------------------------------------------------- #

def multi_head_attention_block(params, query, key, value, mask, heads, *,
                               return_probs=True):
    b_sz, sq, d = query.shape
    sk = key.shape[1]
    dk = d // heads
    scale = 1.0 / math.sqrt(dk)

    w_qkv, b_qkv = params["w_qkv"], params["b_qkv"]   # (3,D,D) bf16, (3,1,D) f32

    if (query is key) and (key is value):
        # Self-attention fast path: ONE fused QKV projection (stacked weights).
        qkv = stacked_projection(query.reshape(-1, d), w_qkv, b_qkv)   # (3,N,D) bf16
        qkv = qkv.reshape(3, b_sz, sq, d)                              # free reshape
        q_sel, k_sel, v_sel = (qkv, 0), (qkv, 1), (qkv, 2)
    else:
        qp = stacked_projection(query.reshape(-1, d), w_qkv[0:1], b_qkv[0:1])
        q_sel = (qp.reshape(1, b_sz, sq, d), 0)
        if key is value:
            kv = stacked_projection(key.reshape(-1, d), w_qkv[1:3], b_qkv[1:3])
            kv = kv.reshape(2, b_sz, sk, d)
            k_sel, v_sel = (kv, 0), (kv, 1)
        else:
            kp = stacked_projection(key.reshape(-1, d), w_qkv[1:2], b_qkv[1:2])
            vp = stacked_projection(value.reshape(-1, d), w_qkv[2:3], b_qkv[2:3])
            k_sel = (kp.reshape(1, b_sz, sk, d), 0)
            v_sel = (vp.reshape(1, b_sz, sk, d), 0)

    ctx, attention_scores = attention_pallas(
        q_sel, k_sel, v_sel, mask, heads=heads, scale=scale,
        return_probs=return_probs)

    # Output projection (fp32 result).
    out = stacked_projection(ctx.reshape(-1, d), params["wo_s"], params["bo_s"],
                             out_dtype=jnp.float32).reshape(b_sz, sq, d)
    return out, attention_scores


# --------------------------------------------------------------------------- #
# Pure-JAX reference (for a loose correctness check), params, and driver
# --------------------------------------------------------------------------- #

def reference_mha(params, query, key, value, mask, heads):
    d = query.shape[-1]
    dk = d // heads

    def lin(x, w, b):
        return x @ w.T + b

    q = lin(query, params["wq"], params["bq"])
    k = lin(key, params["wk"], params["bk"])
    v = lin(value, params["wv"], params["bv"])
    b_sz, sq, _ = q.shape
    sk = k.shape[1]
    q = q.reshape(b_sz, sq, heads, dk).transpose(0, 2, 1, 3)
    k = k.reshape(b_sz, sk, heads, dk).transpose(0, 2, 1, 3)
    v = v.reshape(b_sz, sk, heads, dk).transpose(0, 2, 1, 3)
    s = (q @ jnp.swapaxes(k, -1, -2)) / math.sqrt(dk)
    if mask is not None:
        s = jnp.where(mask == 0, -jnp.inf, s)
    p = jax.nn.softmax(s, axis=-1)
    x = (p @ v).transpose(0, 2, 1, 3).reshape(b_sz, sq, d)
    return lin(x, params["wo"], params["bo"]), p


def init_params(key, dim_model):
    ks = jax.random.split(key, 8)
    init = lambda k: (0.02 * jax.random.normal(k, (dim_model, dim_model))).astype(jnp.float32)
    binit = lambda k: (0.02 * jax.random.normal(k, (dim_model,))).astype(jnp.float32)
    p = {
        "wq": init(ks[0]), "bq": binit(ks[1]),
        "wk": init(ks[2]), "bk": binit(ks[3]),
        "wv": init(ks[4]), "bv": binit(ks[5]),
        "wo": init(ks[6]), "bo": binit(ks[7]),
    }
    # Fused / pre-cast weights built ONCE here (not per forward call): the
    # kernels read them directly, no per-call stack or bf16 cast HBM pass.
    p["w_qkv"] = jnp.stack([p["wq"], p["wk"], p["wv"]]).astype(jnp.bfloat16)
    p["b_qkv"] = jnp.stack([p["bq"], p["bk"], p["bv"]]).reshape(3, 1, dim_model)
    p["wo_s"] = p["wo"][None].astype(jnp.bfloat16)
    p["bo_s"] = p["bo"].reshape(1, 1, dim_model)
    return p


if __name__ == "__main__":
    B, S, dim_model, heads = 2, 8, 32, 4
    root = jax.random.PRNGKey(0)
    kp, kx, kq2 = jax.random.split(root, 3)

    params = init_params(kp, dim_model)
    x = jax.random.normal(kx, (B, S, dim_model), dtype=jnp.float32)

    # Self-attention (fused QKV projection path), causal int8 mask with batch dim.
    causal = jnp.tril(jnp.ones((S, S), jnp.int8))
    mask_b = jnp.broadcast_to(causal, (B, 1, S, S))
    out, attn = multi_head_attention_block(params, x, x, x, mask_b, heads)
    out = jax.block_until_ready(out)
    attn = jax.block_until_ready(attn)
    assert out.shape == (B, S, dim_model) and out.dtype == jnp.float32
    assert attn.shape == (B, heads, S, S)

    ref_out, ref_attn = reference_mha(params, x, x, x, mask_b, heads)
    assert jnp.allclose(out, ref_out, atol=2e-2), float(jnp.max(jnp.abs(out - ref_out)))
    attn_f32 = attn.astype(jnp.float32)
    assert jnp.allclose(attn_f32, ref_attn, atol=2e-2), \
        float(jnp.max(jnp.abs(attn_f32 - ref_attn)))

    # Cross-attention-style path (distinct query; key is value), broadcast mask.
    q2 = jax.random.normal(kq2, (B, S, dim_model), dtype=jnp.float32)
    mask_1 = causal.reshape(1, 1, S, S)
    out2, attn2 = multi_head_attention_block(params, q2, x, x, mask_1, heads)
    out2 = jax.block_until_ready(out2)
    ref_out2, ref_attn2 = reference_mha(params, q2, x, x, mask_1, heads)
    assert jnp.allclose(out2, ref_out2, atol=2e-2)
    assert jnp.allclose(attn2.astype(jnp.float32), ref_attn2, atol=2e-2)

    print("KERNEL_OK")
</pallas_src>

<mosaic_0001>
module attributes {stable_mosaic.version = 11 : i64} {
  func.func @_proj_kernel_nored(%arg0: i32, %arg1: i32, %arg2: i32, %arg3: memref<16x32xf32, #tpu.memory_space<vmem>>, %arg4: memref<1x32x32xbf16, #tpu.memory_space<vmem>>, %arg5: memref<1x1x32xf32, #tpu.memory_space<vmem>>, %arg6: memref<1x16x32xbf16, #tpu.memory_space<vmem>>) attributes {dimension_semantics = [#tpu.dimension_semantics<parallel>, #tpu.dimension_semantics<parallel>, #tpu.dimension_semantics<parallel>], iteration_bounds = array<i64: 3, 1, 1>, scalar_prefetch = 0 : i64, scratch_operands = 0 : i64, tpu.core_type = #tpu.core_type<tc>, window_params = [{transform_indices = @transform_0, window_bounds = array<i64: 16, 32>}, {transform_indices = @transform_1, window_bounds = array<i64: 1, 32, 32>}, {transform_indices = @transform_2, window_bounds = array<i64: 1, 1, 32>}, {transform_indices = @transform_3, window_bounds = array<i64: 1, 16, 32>}]} {
    %c0 = arith.constant 0 : index
    %c0_0 = arith.constant 0 : index
    %0 = vector.load %arg3[%c0, %c0_0] : memref<16x32xf32, #tpu.memory_space<vmem>>, vector<16x32xf32>
    %1 = arith.truncf %0 : vector<16x32xf32> to vector<16x32xbf16>
    %c0_1 = arith.constant 0 : index
    %c0_2 = arith.constant 0 : index
    %c0_3 = arith.constant 0 : index
    %2 = vector.load %arg4[%c0_1, %c0_2, %c0_3] : memref<1x32x32xbf16, #tpu.memory_space<vmem>>, vector<1x32x32xbf16>
    %3 = vector.shape_cast %2 : vector<1x32x32xbf16> to vector<32x32xbf16>
    %cst = arith.constant dense<0.000000e+00> : vector<16x32xf32>
    %4 = tpu.matmul %1, %3, %cst {dimension_numbers = #tpu.dot_dimension_numbers<[1], [1], [0], [0], [0, 0, 1, 0], [], []>} : vector<16x32xbf16>, vector<32x32xbf16>, vector<16x32xf32> -> vector<16x32xf32>
    %c0_4 = arith.constant 0 : index
    %c0_5 = arith.constant 0 : index
    %c0_6 = arith.constant 0 : index
    %5 = vector.load %arg5[%c0_4, %c0_5, %c0_6] : memref<1x1x32xf32, #tpu.memory_space<vmem>>, vector<1x1x32xf32>
    %6 = vector.shape_cast %5 : vector<1x1x32xf32> to vector<1x32xf32>
    %7 = vector.broadcast %6 : vector<1x32xf32> to vector<16x32xf32>
    %8 = arith.addf %4, %7 : vector<16x32xf32>
    %9 = arith.truncf %8 : vector<16x32xf32> to vector<16x32xbf16>
    %c0_7 = arith.constant 0 : index
    %c0_8 = arith.constant 0 : index
    %c0_9 = arith.constant 0 : index
    %10 = vector.load %arg6[%c0_7, %c0_8, %c0_9] : memref<1x16x32xbf16, #tpu.memory_space<vmem>>, vector<1x16x32xbf16>
    %11 = vector.shape_cast %10 : vector<1x16x32xbf16> to vector<16x32xbf16>
    %12 = vector.shape_cast %9 : vector<16x32xbf16> to vector<1x16x32xbf16>
    tpu.vector_store %arg6[%c0_7, %c0_8, %c0_9], %12 {strides = array<i32>} : memref<1x16x32xbf16, #tpu.memory_space<vmem>>, vector<1x16x32xbf16>,
    return
  }
  func.func @transform_0(%arg0: i32, %arg1: i32, %arg2: i32) -> (i32, i32) {
    %c0_i32 = arith.constant 0 : i32
    %c0_i32_0 = arith.constant 0 : i32
    return %arg1, %c0_i32 : i32, i32
  }
  func.func @transform_1(%arg0: i32, %arg1: i32, %arg2: i32) -> (i32, i32, i32) {
    %c0_i32 = arith.constant 0 : i32
    %c0_i32_0 = arith.constant 0 : i32
    return %arg0, %arg2, %c0_i32 : i32, i32, i32
  }
  func.func @transform_2(%arg0: i32, %arg1: i32, %arg2: i32) -> (i32, i32, i32) {
    %c0_i32 = arith.constant 0 : i32
    %c0_i32_0 = arith.constant 0 : i32
    return %arg0, %c0_i32, %arg2 : i32, i32, i32
  }
  func.func @transform_3(%arg0: i32, %arg1: i32, %arg2: i32) -> (i32, i32, i32) {
    %c0_i32 = arith.constant 0 : i32
    return %arg0, %arg1, %arg2 : i32, i32, i32
  }
}

</mosaic_0001>

<bundles_post_ra>
// kernel: tpu_custom_call.1
= control target key start
LH: loop header
LB: loop body
LE: loop exit
PB: predicated region body
PF: predicated region fallthrough
CT: control target
= control target key end

     0   :  { %8 = vsyncpa [#allocation3], 0  ;;  %s1009_s0 = inlined_call_operand.hbm [shape: f32[16,32], index: 0, kind: input, shape index: {}]   ;;  %s1010_s1 = inlined_call_operand.hbm [shape: bf16[3,32,32], index: 1, kind: input, shape index: {}]   ;;  %s1011_s2 = inlined_call_operand.vmem [shape: f32[3,1,32], index: 2, kind: input, shape index: {}]   ;;  %s1012_s3 = inlined_call_operand.hbm [shape: bf16[3,16,32], index: 3, kind: output, shape index: {}]  }
   0x1   :  { %9 = vsyncpa [#allocation6], 0 }
   0x2   :  { %11 = vsyncpa [#allocation6 + $0x1], 0 }
   0x3   :  { %12 = vsyncpa [#allocation4], 0 }
   0x4   :  { %14 = vsyncpa [#allocation4 + $0x1], 0  ;;  %s786_s12 = smov 0   ;;  %s788_s13 = smov 0  }
   0x5   :  { %s790_s14 = smov 0   ;;  %s792_s15 = smov 0  }
   0x6   :  { %s794_s16 = smov 0   ;;  %s796_s17 = smov 0  }
   0x7 LB: > { %s488_s18 = sadd.s32 4294967295, %s753_s17   ;;  %s489_s19 = sadd.s32 4294967294, %s753_s17   ;;  %s753_s17 = sphi %s796_s17, %s20_s17   ;;  %s749_s16 = sphi %s794_s16, %s1035_s16   ;;  %s745_s15 = sphi %s792_s15, %s1034_s15   ;;  %s741_s14 = sphi %s790_s14, %s1033_s14   ;;  %s737_s13 = sphi %s788_s13, %s1032_s13   ;;  %s733_s12 = sphi %s786_s12, %s1031_s12  }
   0x8   : > { %p87_p0 = scmp.ne.s32.totalorder %s737_s13, %s733_s12  ;;  %p820_p1 = scmp.eq.s32.totalorder %s488_s18, 0 }
   0x9   : > { %p824_p2 = scmp.eq.s32.totalorder %s488_s18, 2  ;;  %p149_p3 = scmp.eq.s32.totalorder %s489_s19, 2 }
   0xa   : > { %s1017_s20 = scalar_select %p820_p1, 1, 0 }
   0xb   : > { %s1018_s21 = scalar_select %p824_p2, 1, 0 }
   0xc   : > { %p830_p4 = por %p820_p1, %p87_p0  ;;  %p490_p5 = scmp.ge.s32.totalorder %s753_s17, 1 }
   0xd   : > { %p835_p6 = por %p149_p3, %p87_p0  ;;  %p156_p7 = scmp.lt.s32.totalorder %s753_s17, 4 }
   0xe   : > { %s1019_s22 = scalar_select %p830_p4, 1, 0 }
   0xf   : > { %s1020_s23 = scalar_select %p835_p6, 1, 0 }
  0x10   : > { %p840_p8 = pnand %p490_p5, %p156_p7  ;;  %s755_s25 = smov [#allocation2]  }
  0x11   : > { %s171_s26 = sshll.u32 %s755_s25, 4  ;;  %s39_s28 = sadd.s32 1, %s749_s16  ;;  %s172_s26 = int_to_ptr.vmem [resolvable:$true] %s171_s26 }
  0x12   : > { %s1021_s24 = scalar_select %p840_p8, 1, 0 }
  0x13   : > { %p534_p9 = pneg %p840_p8  ;;  %s609_s4 = scalar_lea.hbm %s1009_s0, 256 }
  0x14   : > { %p610_p11 = scmp.ne.s32.totalorder %s1009_s0, %s609_s4  ;;  %p616_p3 = scmp.lt.u32.totalorder %s609_s4, %s1009_s0 }
  0x15   : > { %p848_p10 = pnand %p534_p9, %p820_p1 }
  0x17   : > { %p611_p12 = pneg %p848_p10 }
  0x19   : > { %p612_p13 = pnand %p611_p12, %p610_p11 }
  0x1b   : > { %p613_p0 = pneg %p612_p13 }
  0x1d   : > { %p618_p5 = pnand %p616_p3, %p613_p0 }
  0x1f   : > { %621 = shalt.err (!%p618_p5)
}
  0x20   : > { %s622_s9 = scalar_lea.vmem %s172_s26, 256  ;;  %p630_p4 = scmp.lt.s32.totalorder %s172_s26, %s172_s26 }
  0x21   : > { %p623_p7 = scmp.ne.s32.totalorder %s172_s26, %s622_s9  ;;  %p631_p1 = scmp.lt.s32.totalorder %s622_s9, %s622_s9 }
  0x23   : > { %p625_p9 = pnand %p623_p7, %p611_p12  ;;  %p632_p8 = por %p631_p1, %p630_p4 }
  0x25   : > { %p626_p6 = pneg %p625_p9 }
  0x27   : > { %p633_p2 = pnand %p632_p8, %p626_p6 }
  0x29   : > { %636 = shalt.err (!%p633_p2)
}
  0x2a   : > { %s756_s10 = smov 128   ;;  %s757_s11 = smov 8  }
  0x2b   : > { %537 = dma.hbm_to_vmem [thread:$0]  (!%p848_p10), %s1009_s0, 256, %s172_s26, [#allocation3], %s756_s10, %s756_s10, %s757_s11  }
  0x2c   : > { %p41_p1 = scmp.ge.s32.totalorder %s39_s28, 3  ;;  %s74_s25 = sadd.s32 1, %s741_s14 }
  0x2d   : > { %p81_p2 = scmp.ne.s32.totalorder %s741_s14, %s737_s13  ;;  %p82_p4 = scmp.eq.s32.totalorder %s753_s17, 0 }
  0x2e   : > { %s1037_s28 = smov (%p41_p1, %s39_s28), 0  ;;  %p1024_p8 = scmp.ne.s32.totalorder %s1018_s21, 0 }
  0x2f   : > { %p875_p6 = por %p82_p4, %p81_p2  ;;  %s69_s27 = ssub.s32 %s749_s16, %s1037_s28 }
  0x30   : > { %p881_p11 = por %p1024_p8, %p81_p2  ;;  %p547_p12 = scmp.lt.s32.totalorder %s753_s17, 3 }
  0x31   : > { %p72_p10 = scmp.eq.s32.totalorder %s69_s27, 0  ;;  %s185_s26 = sand.u32 1, %s741_s14  }
  0x32   : > { %s493_s4 = sshll.u32 %s185_s26, 4  ;;  %s511_s6 = sshll.u32 %s749_s16, 8 }
  0x33   : > { %s890_s5 = scalar_select %p72_p10, %s741_s14, %s74_s25  }
  0x34   : > { %s896_s9 = scalar_lea.hbm %s1010_s1, %s511_s6  ;;  %s189_s21 = scalar_lea.vmem [#allocation5], %s493_s4 }
  0x35   : > { %s198_s10 = sshll.u32 %s189_s21, 4  ;;  %p902_p13 = pnand %p547_p12, %p875_p6  ;;  %s898_s10 = int_to_ptr.vmem [resolvable:$true] %s198_s10 }
  0x36   : > { %s906_s18 = scalar_lea.sflag [#allocation6], %s185_s26  ;;  %s637_s19 = scalar_lea.hbm %s896_s9, 256 }
  0x37   : > { %p638_p0 = scmp.ne.s32.totalorder %s896_s9, %s637_s19  ;;  %p639_p3 = pneg %p902_p13 }
  0x38   : > { %s642_s29 = scalar_lea.hbm %s1010_s1, 768  ;;  %p643_p9 = scmp.lt.u32.totalorder %s896_s9, %s1010_s1 }
  0x39   : > { %p640_p5 = pnand %p639_p3, %p638_p0  ;;  %p644_p1 = scmp.lt.u32.totalorder %s642_s29, %s637_s19 }
  0x3a   : > { %p646_p4 = scmp.lt.u32.totalorder %s637_s19, %s896_s9 }
  0x3b   : > { %p641_p7 = pneg %p640_p5  ;;  %p645_p2 = por %p644_p1, %p643_p9 }
  0x3d   : > { %p647_p6 = por %p646_p4, %p645_p2 }
  0x3f   : > { %p648_p8 = pnand %p647_p6, %p641_p7 }
  0x41   : > { %651 = shalt.err (!%p648_p8)
}
  0x42   : > { %s652_s26 = scalar_lea.vmem %s898_s10, 256  ;;  %s758_s7 = smov [#allocation5]  }
  0x43   : > { %p653_p12 = scmp.ne.s32.totalorder %s898_s10, %s652_s26  ;;  %s657_s8 = sshll.u32 %s758_s7, 4  ;;  %s658_s8 = int_to_ptr.vmem [resolvable:$false] %s657_s8 }
  0x44   : > { %s659_s21 = scalar_lea.vmem %s658_s8, 512  ;;  %p660_p5 = scmp.lt.s32.totalorder %s898_s10, %s658_s8 }
  0x45   : > { %p655_p10 = pnand %p653_p12, %p639_p3  ;;  %p661_p9 = scmp.lt.s32.totalorder %s659_s21, %s652_s26 }
  0x47   : > { %p656_p0 = pneg %p655_p10  ;;  %p662_p1 = por %p661_p9, %p660_p5 }
  0x49   : > { %p663_p2 = pnand %p662_p1, %p656_p0 }
  0x4b   : > { %666 = shalt.err (!%p663_p2)
}
  0x4c   : > { %s759_s19 = smov 64   ;;  %s760_s25 = smov 4  }
  0x4d   : > { %541 = dma.hbm_to_vmem [thread:$0]  (!%p902_p13), %s896_s9, 256, %s898_s10, %s906_s18, %s759_s19, %s759_s19, %s760_s25  }
  0x4e   : > { %p1027_p3 = scmp.ne.s32.totalorder %s1021_s24, 0 }
  0x4f   : > { %p1028_p7 = scmp.ne.s32.totalorder (!%p1027_p3), %s1017_s20, 0 }
  0x50   : > { %219 = sbr.rel (%p1027_p3) target bundleno = 342 (0x156), region = 32 }
  0x57   : > { %720 = dma.done.wait (%p1028_p7), [#allocation3], 256  }
  0x58   : > { %722 = vsyncadd (%p1028_p7), [#allocation3], 4294967040  ;;  %s941_s27 = sand.u32 1, %s737_s13   ;;  %p1029_p4 = scmp.ne.s32.totalorder %s1019_s22, 0 }
  0x59   : > { %s498_s29 = sshll.u32 %s941_s27, 4  ;;  %s226_s4 = scalar_lea.sflag [#allocation6], %s941_s27 }
  0x5a   : > { %s229_s6 = scalar_lea.vmem [#allocation5], %s498_s29 }
  0x5b   : > { %724 = dma.done.wait (%p1029_p4), %s226_s4, 256  }
  0x5c   : > { %726 = vsyncadd (%p1029_p4), %s226_s4, 4294967040  ;;  %v761_v0 = vmov 0.0   ;;  %vm762_vm0 = vmmov 0   ;;  %vm292_vm1 = vcmask 261120   ;;  %v607_v1 = vld [vmem:[%s229_s6] sm:$0xff]   ;;  %v608_v3 = vld [vmem:[%s229_s6 + $0x8] sm:$0xff]  }
  0x5d   : > { %518 = vmatprep.subr.bf16.mxu0 %v761_v0  ;;  %522 = vmatprep.mubr.msk.bf16.mxu0 %vm762_vm0, %v761_v0  ;;  %v297_v2 = vsel %vm292_vm1, %v607_v1, 0  ;;  %v300_v4 = vsel %vm292_vm1, %v608_v3, 0  ;;  %v268_v5 = vld [vmem:[#allocation2] sm:$0xff]  ;;  %v269_v6 = vld [vmem:[#allocation2 + $0x8] sm:$0xff]  ;;  %p260_p13 = scmp.lt.s32.totalorder %s745_s15, 2  ;;  %s499_s22 = sshll.u32 %s941_s27, 3 }
  0x5e   : > { %519 = vmatpush3.bf16.xpose.msra.mxu0 %v297_v2  ;;  %v270_v7 = vpack.c.bf16 %v269_v6, %v268_v5  ;;  %s257_s11 = scalar_lea.vmem [#allocation7], %s499_s22  ;;  %s514_s26 = sshll.u32 %s745_s15, 7  ;;  %vm351_vm2 = vcmask 257024  }
  0x5f   : > { %520 = vmatprep.subr.bf16.mxu0 %v761_v0  ;;  %s261_s20 = scalar_select %p260_p13, %s745_s15, 2 }
  0x60   : > { %s371_s18 = sshll.u32 %s257_s11, 4  ;;  %s959_s21 = scalar_lea.hbm %s1012_s3, %s514_s26  ;;  %s961_s18 = int_to_ptr.vmem [resolvable:$true] %s371_s18 }
  0x61   : > { %s265_s10 = scalar_lea.vmem %s1011_s2, %s261_s20  ;;  %s355_s19 = scalar_lea.sflag [#allocation4], %s941_s27 }
  0x62   : > { %v500_v8 = vld [vmem:[%s265_s10] ss:$0 sm:$0xff]  ;;  %s667_s15 = scalar_lea.vmem %s961_s18, 128  ;;  %s763_s25 = smov [#allocation7]  }
  0x63   : > { %p668_p6 = scmp.ne.s32.totalorder %s961_s18, %s667_s15  ;;  %s671_s29 = sshll.u32 %s763_s25, 4  ;;  %s672_s29 = int_to_ptr.vmem [resolvable:$false] %s671_s29 }
  0x64   : > { %s673_s4 = scalar_lea.vmem %s672_s29, 256  ;;  %p674_p10 = scmp.lt.s32.totalorder %s961_s18, %s672_s29 }
  0x65   : > { %p669_p8 = pnand %p668_p6, %p881_p11  ;;  %p675_p0 = scmp.lt.s32.totalorder %s673_s4, %s667_s15 }
  0x66   : > { %521 = vmatpush3.bf16.xpose.msra.mxu0 %v300_v4 }
  0x67   : > { %p670_p12 = pneg %p669_p8  ;;  %p676_p5 = por %p675_p0, %p674_p10 }
  0x69   : > { %p677_p9 = pnand %p676_p5, %p670_p12 }
  0x6d   : > { %523 = vmatmul.mubr.msk.bf16.vlgmr.msra.gmra.mrb[0].mxu0 %vm292_vm1, %v270_v7 }
 0x140   : > { %v336_v9 = vpop.f32.mrb[0].mxu0 }
 0x141   : > { %v337_v10 = vadd.f32 %v500_v8, %v336_v9  ;;  %v524_v11 = vpop.f32.mrb[1].mxu0 }
 0x142   : > { %v339_v12 = vpop.f32.mrb[2].mxu0 }
 0x143   : > { %v512_v13 = vpack.c.bf16 %v337_v10, %v337_v10  ;;  %v340_v14 = vadd.f32 %v500_v8, %v339_v12  ;;  %v525_v15 = vpop.f32.mrb[3].mxu0 }
 0x145   : > { %352 = vst.msk [vmem:[%s257_s11] sm:$0xf] %vm351_vm2, %v512_v13  ;;  %v513_v16 = vpack.c.bf16 %v340_v14, %v340_v14 }
 0x147   : > { %353 = vst.msk [vmem:[%s257_s11 + $0x4] sm:$0xf] %vm351_vm2, %v513_v16 }
 0x148   : > { %680 = shalt.err (!%p677_p9)
}
 0x149   : > { %s681_s6 = scalar_lea.hbm %s959_s21, 128  ;;  %s685_s24 = scalar_lea.hbm %s1012_s3, 384 }
 0x14a   : > { %p682_p1 = scmp.ne.s32.totalorder %s959_s21, %s681_s6  ;;  %p686_p7 = scmp.lt.u32.totalorder %s959_s21, %s1012_s3 }
 0x14b   : > { %p687_p4 = scmp.lt.u32.totalorder %s685_s24, %s681_s6  ;;  %p689_p6 = scmp.lt.u32.totalorder %s681_s6, %s959_s21 }
 0x14c   : > { %p683_p2 = pnand %p682_p1, %p881_p11 }
 0x14d   : > { %p688_p13 = por %p687_p4, %p686_p7 }
 0x14e   : > { %p684_p3 = pneg %p683_p2 }
 0x14f   : > { %p690_p8 = por %p689_p6, %p688_p13 }
 0x151   : > { %p691_p12 = pnand %p690_p8, %p684_p3 }
 0x153   : > { %694 = shalt.err (!%p691_p12)
}
 0x154   : > { %s764_s11 = smov 64   ;;  %s765_s26 = smov 4  }
 0x155   : > { %532 = dma.vmem_to_hbm [thread:$0]  (%p881_p11), %s961_s18, 128, %s959_s21, %s355_s19, %s764_s11, %s764_s11, %s765_s26  }
 0x156 PF: > { %p549_p10 = scmp.ge.s32.totalorder %s753_s17, 2  ;;  %s386_s7 = sand.u32 1, %s733_s12  }
 0x157   : > { %p1030_p0 = scmp.ne.s32.totalorder %s1020_s23, 0  ;;  %s387_s8 = scalar_lea.sflag [#allocation4], %s386_s7 }
 0x159   : > { %p543_p5 = pnand %p549_p10, %p1030_p0 }
 0x15b   : > { %728 = dma.done.wait (!%p543_p5), %s387_s8, 128  }
 0x15c   : > { %730 = vsyncadd (!%p543_p5), %s387_s8, 4294967168  ;;  %s20_s17 = sadd.s32 1, %s753_s17   ;;  %s1031_s12 = smov %s737_s13 }
 0x15d   : > { %p17_p9 = scmp.ge.s32.totalorder %s20_s17, 5   ;;  %s1032_s13 = smov %s741_s14 }
 0x15e   : > { %s1033_s14 = smov %s890_s5  ;;  %s1034_s15 = smov %s749_s16 }
 0x15f   : > { %s1035_s16 = smov %s1037_s28  ;;  %19 = sbr.rel (!%p17_p9) target bundleno = 7 (0x7), region = 86 }
 0x166   :  { %392 = vsyncpa [#allocation3], 1 }
 0x167   :  { %394 = vsyncpa [#allocation3 + $0x1], 1 }
 0x168   :  { %395 = vsyncpa [#allocation6], 1 }
 0x169   :  { %397 = vsyncpa [#allocation6 + $0x1], 1 }
 0x16a   :  { %398 = vsyncpa [#allocation4], 1 }
 0x16b   :  { %400 = vsyncpa [#allocation4 + $0x1], 1 }

</bundles_post_ra>
